<compile_context>
chip_gen: v7x
topology: tpu7x:2x2x1
jax: 0.10.0
libtpu: 0.0.40
codegen_flags: <defaults>
</compile_context>

<pallas_src>
import math

import jax
import jax.numpy as jnp
from jax.experimental import pallas as pl
from jax.experimental.pallas import tpu as pltpu


def _round_up(x, m):
    return (x + m - 1) // m * m


def _embeddings_kernel(x_ref, w1_ref, b1_ref, w2_ref, b2_ref, o_ref):
    # Cast the activation tile to the MXU compute dtype in VMEM; the HBM copy
    # keeps its original dtype / width (no wrapper-side cast or pad).
    xb = x_ref[...].astype(w1_ref.dtype)
    # First Linear: (tm, K) @ (K, Np) -> f32 accumulation, + bias, ReLU (f32).
    h = jnp.dot(xb, w1_ref[...], preferred_element_type=jnp.float32)
    h = jnp.maximum(h + b1_ref[...], 0.0)
    # Second Linear written straight into the output ref (lane-dense store).
    o_ref[...] = (
        jnp.dot(h.astype(w2_ref.dtype), w2_ref[...],
                preferred_element_type=jnp.float32)
        + b2_ref[...]
    ).astype(o_ref.dtype)


def _chip_config():
    """Per-generation VMEM budget / tile caps (conservative when unknown)."""
    try:
        kind = jax.devices()[0].device_kind.lower()
    except Exception:  # no device visible at trace time
        kind = ""
    if ("v4" in kind) or ("v5" in kind) or ("v6" in kind):
        # 128 MiB VMEM per TensorCore: use big row tiles, high limit.
        return dict(budget=96 << 20, limit_cap=100 << 20, tm_cap=1024,
                    want_two_tiles=False)
    # v7x (64 MiB per TC) or unknown: conservative limits, and prefer >= 2
    # row tiles so the "parallel" grid axis can shard across both TCs.
    return dict(budget=40 << 20, limit_cap=48 << 20, tm_cap=512,
                want_two_tiles=True)


def prepare_embedding_params(w1, b1, w2, b2, *, compute_dtype=jnp.bfloat16,
                             lane_multiple=128):
    """One-time weight prep (transpose / pad / cast), not per forward call.

    w1: (d_model, vocab), b1: (d_model,), w2: (d_model, d_model),
    b2: (d_model,) in PyTorch nn.Linear layout.
    """
    d_model, vocab = w1.shape
    n_padded = _round_up(d_model, lane_multiple)
    pad_n = n_padded - d_model
    return dict(
        # (vocab, Np): K stays at `vocab` (x is read unpadded); N is padded
        # with zero columns so stores and the second matmul are lane-dense.
        w1t=jnp.pad(w1.T.astype(compute_dtype), ((0, 0), (0, pad_n))),
        b1=jnp.pad(b1.astype(jnp.float32).reshape(1, -1), ((0, 0), (0, pad_n))),
        w2t=jnp.pad(w2.T.astype(compute_dtype), ((0, pad_n), (0, pad_n))),
        b2=jnp.pad(b2.astype(jnp.float32).reshape(1, -1), ((0, 0), (0, pad_n))),
        vocab=vocab,
        d_model=d_model,
        n_padded=n_padded,
    )


_FEATURE = {"single_buffer_weights": None}   # cached pl.Buffered(1) support


def embeddings_forward(x, params, *, out_dtype=None):
    """x: (..., vocab) -> (..., d_model); params from prepare_embedding_params."""
    vocab, d_model, np_ = params["vocab"], params["d_model"], params["n_padded"]
    assert x.shape[-1] == vocab
    out_dtype = x.dtype if out_dtype is None else jnp.dtype(out_dtype)
    lead = x.shape[:-1]
    m = int(math.prod(lead)) if lead else 1
    x2 = x.reshape(m, vocab)                    # no HBM cast / pad of x

    cfg = _chip_config()
    csize = jnp.dtype(params["w1t"].dtype).itemsize
    xsize = jnp.dtype(x2.dtype).itemsize
    osize = jnp.dtype(out_dtype).itemsize
    sub = 16 if csize == 2 else 8               # sublane pack of compute dtype

    # Row-tile selection.
    tm = min(cfg["tm_cap"], _round_up(m, sub))
    if cfg["want_two_tiles"] and m >= 2 * sub:
        tm = min(tm, _round_up(-(-m // 2), sub))  # >= 2 tiles for megacore
    tm = max(sub, _round_up(tm, sub))

    def vmem_bytes(tm_, weight_bufs):
        weights = weight_bufs * ((vocab * np_ + np_ * np_) * csize
                                 + 2 * np_ * 4)
        act = 2 * tm_ * vocab * xsize           # double-buffered x tiles
        outb = 2 * tm_ * np_ * osize            # double-buffered out tiles
        # In-kernel temporaries: x cast, f32 h, compute-dtype cast of h.
        interm = tm_ * vocab * csize + tm_ * np_ * (4 + csize)
        return weights + act + outb + interm

    while tm > sub and vmem_bytes(tm, 1) > cfg["budget"]:
        tm = max(sub, _round_up(tm // 2, sub))

    grid = (pl.cdiv(m, tm),)
    # Limit sized for the worst case (double-buffered weights) plus headroom
    # for compiler-internal scratch, capped per generation.
    vmem_limit = int(min(max(1.25 * vmem_bytes(tm, 2) + (2 << 20), 16 << 20),
                         cfg["limit_cap"]))

    def make_call(single_buffer_weights):
        if single_buffer_weights:
            def wspec(shape):
                return pl.BlockSpec(shape, lambda i: (0, 0),
                                    pipeline_mode=pl.Buffered(1))
        else:
            def wspec(shape):
                return pl.BlockSpec(shape, lambda i: (0, 0))
        return pl.pallas_call(
            _embeddings_kernel,
            out_shape=jax.ShapeDtypeStruct((m, np_), out_dtype),
            grid=grid,
            in_specs=[
                pl.BlockSpec((tm, vocab), lambda i: (i, 0)),  # x rows (pipelined)
                wspec((vocab, np_)),                          # W1^T (resident)
                wspec((1, np_)),                              # b1
                wspec((np_, np_)),                            # W2^T (resident)
                wspec((1, np_)),                              # b2
            ],
            out_specs=pl.BlockSpec((tm, np_), lambda i: (i, 0)),
            compiler_params=pltpu.CompilerParams(
                dimension_semantics=("parallel",),
                vmem_limit_bytes=vmem_limit,
            ),
        )

    args = (x2, params["w1t"], params["b1"], params["w2t"], params["b2"])
    out = None
    if _FEATURE["single_buffer_weights"] is not False:
        try:
            out = make_call(True)(*args)
            _FEATURE["single_buffer_weights"] = True
        except Exception:
            _FEATURE["single_buffer_weights"] = False
    if out is None:
        out = make_call(False)(*args)

    if np_ != d_model:
        out = out[:, :d_model]      # padded columns are exact zeros; drop them
    return out.reshape(*lead, d_model)


def init_params(key, d_model, vocab):
    """Deterministic init mimicking PyTorch nn.Linear defaults
    (uniform +/- 1/sqrt(fan_in))."""
    k1, k2, k3, k4 = jax.random.split(key, 4)
    bound1 = 1.0 / math.sqrt(vocab)
    bound2 = 1.0 / math.sqrt(d_model)
    w1 = jax.random.uniform(k1, (d_model, vocab), jnp.float32, -bound1, bound1)
    b1 = jax.random.uniform(k2, (d_model,), jnp.float32, -bound1, bound1)
    w2 = jax.random.uniform(k3, (d_model, d_model), jnp.float32, -bound2, bound2)
    b2 = jax.random.uniform(k4, (d_model,), jnp.float32, -bound2, bound2)
    return w1, b1, w2, b2


if __name__ == "__main__":
    key = jax.random.PRNGKey(0)
    d_model, vocab = 32, 16
    batch, seq = 2, 8

    kx, kp = jax.random.split(key)
    x = jax.random.normal(kx, (batch, seq, vocab), jnp.float32)
    w1, b1, w2, b2 = init_params(kp, d_model, vocab)

    # Pure-JAX reference.
    ref = jnp.maximum(x @ w1.T + b1, 0.0) @ w2.T + b2

    # f32 MXU path: tight tolerance.
    p32 = prepare_embedding_params(w1, b1, w2, b2, compute_dtype=jnp.float32)
    y32 = jax.block_until_ready(embeddings_forward(x, p32))
    assert y32.shape == (batch, seq, d_model)
    assert jnp.allclose(y32, ref, atol=1e-5, rtol=1e-5), "f32 mismatch"

    # bf16 MXU path (default): loose tolerance from operand rounding.
    pbf = prepare_embedding_params(w1, b1, w2, b2)
    ybf = jax.block_until_ready(embeddings_forward(x, pbf))
    assert ybf.shape == (batch, seq, d_model)
    assert jnp.allclose(ybf, ref, atol=3e-2, rtol=3e-2), "bf16 mismatch"

    print("KERNEL_OK")
</pallas_src>

<mosaic_0001>
module attributes {stable_mosaic.version = 11 : i64} {
  func.func @_embeddings_kernel(%arg0: i32, %arg1: memref<8x16xf32, #tpu.memory_space<vmem>>, %arg2: memref<16x128xf32, #tpu.memory_space<vmem>>, %arg3: memref<1x128xf32, #tpu.memory_space<vmem>>, %arg4: memref<128x128xf32, #tpu.memory_space<vmem>>, %arg5: memref<1x128xf32, #tpu.memory_space<vmem>>, %arg6: memref<8x128xf32, #tpu.memory_space<vmem>>) attributes {dimension_semantics = [#tpu.dimension_semantics<parallel>], iteration_bounds = array<i64: 2>, scalar_prefetch = 0 : i64, scratch_operands = 0 : i64, tpu.core_type = #tpu.core_type<tc>, window_params = [{transform_indices = @transform_0, window_bounds = array<i64: 8, 16>}, {pipeline_mode = #tpu.pipeline_mode<synchronous>, transform_indices = @transform_1, window_bounds = array<i64: 16, 128>}, {pipeline_mode = #tpu.pipeline_mode<synchronous>, transform_indices = @transform_2, window_bounds = array<i64: 1, 128>}, {pipeline_mode = #tpu.pipeline_mode<synchronous>, transform_indices = @transform_3, window_bounds = array<i64: 128, 128>}, {pipeline_mode = #tpu.pipeline_mode<synchronous>, transform_indices = @transform_4, window_bounds = array<i64: 1, 128>}, {transform_indices = @transform_5, window_bounds = array<i64: 8, 128>}]} {
    %c0 = arith.constant 0 : index
    %c0_0 = arith.constant 0 : index
    %0 = vector.load %arg1[%c0, %c0_0] : memref<8x16xf32, #tpu.memory_space<vmem>>, vector<8x16xf32>
    %c0_1 = arith.constant 0 : index
    %c0_2 = arith.constant 0 : index
    %1 = vector.load %arg2[%c0_1, %c0_2] : memref<16x128xf32, #tpu.memory_space<vmem>>, vector<16x128xf32>
    %cst = arith.constant dense<0.000000e+00> : vector<8x128xf32>
    %2 = tpu.matmul %0, %1, %cst {dimension_numbers = #tpu.dot_dimension_numbers<[1], [0], [0], [1], [0, 0, 1, 1], [], []>} : vector<8x16xf32>, vector<16x128xf32>, vector<8x128xf32> -> vector<8x128xf32>
    %c0_3 = arith.constant 0 : index
    %c0_4 = arith.constant 0 : index
    %3 = vector.load %arg3[%c0_3, %c0_4] : memref<1x128xf32, #tpu.memory_space<vmem>>, vector<1x128xf32>
    %4 = vector.broadcast %3 : vector<1x128xf32> to vector<8x128xf32>
    %5 = arith.addf %2, %4 : vector<8x128xf32>
    %cst_5 = arith.constant 0.000000e+00 : f32
    %6 = vector.broadcast %cst_5 : f32 to vector<8x128xf32>
    %7 = arith.maximumf %5, %6 : vector<8x128xf32>
    %c0_6 = arith.constant 0 : index
    %c0_7 = arith.constant 0 : index
    %8 = vector.load %arg4[%c0_6, %c0_7] : memref<128x128xf32, #tpu.memory_space<vmem>>, vector<128x128xf32>
    %cst_8 = arith.constant dense<0.000000e+00> : vector<8x128xf32>
    %9 = tpu.matmul %7, %8, %cst_8 {dimension_numbers = #tpu.dot_dimension_numbers<[1], [0], [0], [1], [0, 0, 1, 1], [], []>} : vector<8x128xf32>, vector<128x128xf32>, vector<8x128xf32> -> vector<8x128xf32>
    %c0_9 = arith.constant 0 : index
    %c0_10 = arith.constant 0 : index
    %10 = vector.load %arg5[%c0_9, %c0_10] : memref<1x128xf32, #tpu.memory_space<vmem>>, vector<1x128xf32>
    %11 = vector.broadcast %10 : vector<1x128xf32> to vector<8x128xf32>
    %12 = arith.addf %9, %11 : vector<8x128xf32>
    %c0_11 = arith.constant 0 : index
    %c0_12 = arith.constant 0 : index
    %13 = vector.load %arg6[%c0_11, %c0_12] : memref<8x128xf32, #tpu.memory_space<vmem>>, vector<8x128xf32>
    tpu.vector_store %arg6[%c0_11, %c0_12], %12 {strides = array<i32>} : memref<8x128xf32, #tpu.memory_space<vmem>>, vector<8x128xf32>,
    return
  }
  func.func @transform_0(%arg0: i32) -> (i32, i32) {
    %c0_i32 = arith.constant 0 : i32
    %c0_i32_0 = arith.constant 0 : i32
    return %arg0, %c0_i32 : i32, i32
  }
  func.func @transform_1(%arg0: i32) -> (i32, i32) {
    %c0_i32 = arith.constant 0 : i32
    %c0_i32_0 = arith.constant 0 : i32
    %c0_i32_1 = arith.constant 0 : i32
    return %c0_i32, %c0_i32_0 : i32, i32
  }
  func.func @transform_2(%arg0: i32) -> (i32, i32) {
    %c0_i32 = arith.constant 0 : i32
    %c0_i32_0 = arith.constant 0 : i32
    %c0_i32_1 = arith.constant 0 : i32
    return %c0_i32, %c0_i32_0 : i32, i32
  }
  func.func @transform_3(%arg0: i32) -> (i32, i32) {
    %c0_i32 = arith.constant 0 : i32
    %c0_i32_0 = arith.constant 0 : i32
    %c0_i32_1 = arith.constant 0 : i32
    return %c0_i32, %c0_i32_0 : i32, i32
  }
  func.func @transform_4(%arg0: i32) -> (i32, i32) {
    %c0_i32 = arith.constant 0 : i32
    %c0_i32_0 = arith.constant 0 : i32
    %c0_i32_1 = arith.constant 0 : i32
    return %c0_i32, %c0_i32_0 : i32, i32
  }
  func.func @transform_5(%arg0: i32) -> (i32, i32) {
    %c0_i32 = arith.constant 0 : i32
    %c0_i32_0 = arith.constant 0 : i32
    return %arg0, %c0_i32 : i32, i32
  }
}

module attributes {stable_mosaic.version = 11 : i64} {
  func.func @_embeddings_kernel(%arg0: i32, %arg1: memref<8x16xf32, #tpu.memory_space<vmem>>, %arg2: memref<16x128xf32, #tpu.memory_space<vmem>>, %arg3: memref<1x128xf32, #tpu.memory_space<vmem>>, %arg4: memref<128x128xf32, #tpu.memory_space<vmem>>, %arg5: memref<1x128xf32, #tpu.memory_space<vmem>>, %arg6: memref<8x128xf32, #tpu.memory_space<vmem>>) attributes {dimension_semantics = [#tpu.dimension_semantics<parallel>], iteration_bounds = array<i64: 2>, scalar_prefetch = 0 : i64, scratch_operands = 0 : i64, tpu.core_type = #tpu.core_type<tc>, window_params = [{transform_indices = @transform_0, window_bounds = array<i64: 8, 16>}, {pipeline_mode = #tpu.pipeline_mode<synchronous>, transform_indices = @transform_1, window_bounds = array<i64: 16, 128>}, {pipeline_mode = #tpu.pipeline_mode<synchronous>, transform_indices = @transform_2, window_bounds = array<i64: 1, 128>}, {pipeline_mode = #tpu.pipeline_mode<synchronous>, transform_indices = @transform_3, window_bounds = array<i64: 128, 128>}, {pipeline_mode = #tpu.pipeline_mode<synchronous>, transform_indices = @transform_4, window_bounds = array<i64: 1, 128>}, {transform_indices = @transform_5, window_bounds = array<i64: 8, 128>}]} {
    %c0 = arith.constant 0 : index
    %c0_0 = arith.constant 0 : index
    %0 = vector.load %arg1[%c0, %c0_0] : memref<8x16xf32, #tpu.memory_space<vmem>>, vector<8x16xf32>
    %c0_1 = arith.constant 0 : index
    %c0_2 = arith.constant 0 : index
    %1 = vector.load %arg2[%c0_1, %c0_2] : memref<16x128xf32, #tpu.memory_space<vmem>>, vector<16x128xf32>
    %cst = arith.constant dense<0.000000e+00> : vector<8x128xf32>
    %2 = tpu.matmul %0, %1, %cst {dimension_numbers = #tpu.dot_dimension_numbers<[1], [0], [0], [1], [0, 0, 1, 1], [], []>} : vector<8x16xf32>, vector<16x128xf32>, vector<8x128xf32> -> vector<8x128xf32>
    %c0_3 = arith.constant 0 : index
    %c0_4 = arith.constant 0 : index
    %3 = vector.load %arg3[%c0_3, %c0_4] : memref<1x128xf32, #tpu.memory_space<vmem>>, vector<1x128xf32>
    %4 = vector.broadcast %3 : vector<1x128xf32> to vector<8x128xf32>
    %5 = arith.addf %2, %4 : vector<8x128xf32>
    %cst_5 = arith.constant 0.000000e+00 : f32
    %6 = vector.broadcast %cst_5 : f32 to vector<8x128xf32>
    %7 = arith.maximumf %5, %6 : vector<8x128xf32>
    %c0_6 = arith.constant 0 : index
    %c0_7 = arith.constant 0 : index
    %8 = vector.load %arg4[%c0_6, %c0_7] : memref<128x128xf32, #tpu.memory_space<vmem>>, vector<128x128xf32>
    %cst_8 = arith.constant dense<0.000000e+00> : vector<8x128xf32>
    %9 = tpu.matmul %7, %8, %cst_8 {dimension_numbers = #tpu.dot_dimension_numbers<[1], [0], [0], [1], [0, 0, 1, 1], [], []>} : vector<8x128xf32>, vector<128x128xf32>, vector<8x128xf32> -> vector<8x128xf32>
    %c0_9 = arith.constant 0 : index
    %c0_10 = arith.constant 0 : index
    %10 = vector.load %arg5[%c0_9, %c0_10] : memref<1x128xf32, #tpu.memory_space<vmem>>, vector<1x128xf32>
    %11 = vector.broadcast %10 : vector<1x128xf32> to vector<8x128xf32>
    %12 = arith.addf %9, %11 : vector<8x128xf32>
    %c0_11 = arith.constant 0 : index
    %c0_12 = arith.constant 0 : index
    %13 = vector.load %arg6[%c0_11, %c0_12] : memref<8x128xf32, #tpu.memory_space<vmem>>, vector<8x128xf32>
    tpu.vector_store %arg6[%c0_11, %c0_12], %12 {strides = array<i32>} : memref<8x128xf32, #tpu.memory_space<vmem>>, vector<8x128xf32>,
    return
  }
  func.func @transform_0(%arg0: i32) -> (i32, i32) {
    %c0_i32 = arith.constant 0 : i32
    %c0_i32_0 = arith.constant 0 : i32
    return %arg0, %c0_i32 : i32, i32
  }
  func.func @transform_1(%arg0: i32) -> (i32, i32) {
    %c0_i32 = arith.constant 0 : i32
    %c0_i32_0 = arith.constant 0 : i32
    %c0_i32_1 = arith.constant 0 : i32
    return %c0_i32, %c0_i32_0 : i32, i32
  }
  func.func @transform_2(%arg0: i32) -> (i32, i32) {
    %c0_i32 = arith.constant 0 : i32
    %c0_i32_0 = arith.constant 0 : i32
    %c0_i32_1 = arith.constant 0 : i32
    return %c0_i32, %c0_i32_0 : i32, i32
  }
  func.func @transform_3(%arg0: i32) -> (i32, i32) {
    %c0_i32 = arith.constant 0 : i32
    %c0_i32_0 = arith.constant 0 : i32
    %c0_i32_1 = arith.constant 0 : i32
    return %c0_i32, %c0_i32_0 : i32, i32
  }
  func.func @transform_4(%arg0: i32) -> (i32, i32) {
    %c0_i32 = arith.constant 0 : i32
    %c0_i32_0 = arith.constant 0 : i32
    %c0_i32_1 = arith.constant 0 : i32
    return %c0_i32, %c0_i32_0 : i32, i32
  }
  func.func @transform_5(%arg0: i32) -> (i32, i32) {
    %c0_i32 = arith.constant 0 : i32
    %c0_i32_0 = arith.constant 0 : i32
    return %arg0, %c0_i32 : i32, i32
  }
}

</mosaic_0001>

<bundles_post_ra>
// kernel: tpu_custom_call.1
= control target key start
LH: loop header
LB: loop body
LE: loop exit
PB: predicated region body
PF: predicated region fallthrough
CT: control target
= control target key end

     0   :  { %10 = vsyncpa [#allocation3], 0  ;;  %s1167_s0 = inlined_call_operand.hbm [shape: f32[16,16], index: 0, kind: input, shape index: {}]   ;;  %s1168_s1 = inlined_call_operand.hbm [shape: f32[16,128], index: 1, kind: input, shape index: {}]   ;;  %s1169_s2 = inlined_call_operand.vmem [shape: f32[1,128], index: 2, kind: input, shape index: {}]   ;;  %s1170_s3 = inlined_call_operand.hbm [shape: f32[128,128], index: 3, kind: input, shape index: {}]   ;;  %s1171_s4 = inlined_call_operand.vmem [shape: f32[1,128], index: 4, kind: input, shape index: {}]   ;;  %s1172_s5 = inlined_call_operand.hbm [shape: f32[16,128], index: 5, kind: output, shape index: {}]  }
   0x1   :  { %12 = vsyncpa [#allocation3 + $0x1], 0 }
   0x2   :  { %13 = vsyncpa [#allocation6], 0 }
   0x3   :  { %14 = vsyncpa [#allocation4], 0 }
   0x4   :  { %16 = vsyncpa [#allocation4 + $0x1], 0  ;;  %s928_s18 = smov 0   ;;  %s930_s19 = smov 0  }
   0x5   :  { %s932_s20 = smov 0   ;;  %s934_s21 = smov 0  }
   0x6 LB: > { %s949_s22 = sadd.s32 4294967295, %s887_s21   ;;  %s551_s23 = sadd.s32 4294967294, %s887_s21   ;;  %s887_s21 = sphi %s934_s21, %s1192_s21   ;;  %s883_s20 = sphi %s932_s20, %s1191_s20   ;;  %s879_s19 = sphi %s930_s19, %s1190_s19   ;;  %s875_s18 = sphi %s928_s18, %s1189_s18  }
   0x7   : > { %p42_p0 = scmp.ne.s32.totalorder %s879_s19, %s875_s18  ;;  %p1173_p1 = scmp.eq.s32.totalorder %s949_s22, 0 }
   0x8   : > { %p156_p3 = scmp.eq.s32.totalorder %s551_s23, 1  ;;  %p552_p5 = scmp.ge.s32.totalorder %s887_s21, 1 }
   0x9   : > { %p958_p4 = por %p1173_p1, %p42_p0  ;;  %p163_p7 = scmp.lt.s32.totalorder %s887_s21, 3 }
   0xa   : > { %p963_p6 = por %p156_p3, %p42_p0  ;;  %s889_s27 = smov [#allocation5]  }
   0xb   : > { %s1176_s24 = scalar_select %p958_p4, 1, 0 }
   0xc   : > { %s1177_s25 = scalar_select %p963_p6, 1, 0 }
   0xd   : > { %p968_p8 = pnand %p552_p5, %p163_p7  ;;  %s175_s28 = sshll.u32 %s889_s27, 4  ;;  %s972_s28 = int_to_ptr.vmem [resolvable:$true] %s175_s28 }
   0xe   : > { %s890_s30 = smov [#allocation7]   ;;  %s731_s9 = scalar_lea.hbm %s1168_s1, 256 }
   0xf   : > { %p671_p9 = pneg %p968_p8  ;;  %s191_s6 = sshll.u32 %s890_s30, 4  ;;  %s983_s6 = int_to_ptr.vmem [resolvable:$true] %s191_s6 }
  0x10   : > { %p732_p12 = scmp.ne.s32.totalorder %s1168_s1, %s731_s9  ;;  %p738_p5 = scmp.lt.u32.totalorder %s731_s9, %s1168_s1 }
  0x11   : > { %p979_p11 = pnand %p671_p9, %p1173_p1 }
  0x13   : > { %p733_p13 = pneg %p979_p11 }
  0x15   : > { %p734_p0 = pnand %p733_p13, %p732_p12 }
  0x17   : > { %p735_p3 = pneg %p734_p0 }
  0x19   : > { %p740_p7 = pnand %p738_p5, %p735_p3 }
  0x1b   : > { %743 = shalt.err (!%p740_p7)
}
  0x1c   : > { %s744_s14 = scalar_lea.vmem %s972_s28, 256  ;;  %p752_p2 = scmp.lt.s32.totalorder %s972_s28, %s972_s28 }
  0x1d   : > { %p745_p9 = scmp.ne.s32.totalorder %s972_s28, %s744_s14  ;;  %p753_p12 = scmp.lt.s32.totalorder %s744_s14, %s744_s14 }
  0x1f   : > { %p747_p10 = pnand %p745_p9, %p733_p13  ;;  %p754_p0 = por %p753_p12, %p752_p2 }
  0x21   : > { %p748_p1 = pneg %p747_p10 }
  0x23   : > { %p755_p6 = pnand %p754_p0, %p748_p1 }
  0x25   : > { %758 = shalt.err (!%p755_p6)
}
  0x26   : > { %s891_s15 = smov 128   ;;  %s892_s16 = smov 8  }
  0x27   : > { %674 = dma.hbm_to_vmem [thread:$0]  (!%p979_p11), %s1168_s1, 256, %s972_s28, [#allocation6], %s891_s15, %s891_s15, %s892_s16  }
  0x28   : > { %s759_s7 = scalar_lea.hbm %s1170_s3, 2048 }
  0x29   : > { %p760_p2 = scmp.ne.s32.totalorder %s1170_s3, %s759_s7  ;;  %p766_p10 = scmp.lt.u32.totalorder %s759_s7, %s1170_s3 }
  0x2b   : > { %p762_p1 = pnand %p760_p2, %p733_p13 }
  0x2d   : > { %p763_p6 = pneg %p762_p1 }
  0x2f   : > { %p768_p3 = pnand %p766_p10, %p763_p6 }
  0x31   : > { %771 = shalt.err (!%p768_p3)
}
  0x32   : > { %s772_s28 = scalar_lea.vmem %s983_s6, 2048  ;;  %p780_p12 = scmp.lt.s32.totalorder %s983_s6, %s983_s6 }
  0x33   : > { %p773_p5 = scmp.ne.s32.totalorder %s983_s6, %s772_s28  ;;  %p781_p0 = scmp.lt.s32.totalorder %s772_s28, %s772_s28 }
  0x35   : > { %p775_p7 = pnand %p773_p5, %p733_p13  ;;  %p782_p2 = por %p781_p0, %p780_p12 }
  0x37   : > { %p776_p9 = pneg %p775_p7 }
  0x39   : > { %p783_p1 = pnand %p782_p2, %p776_p9 }
  0x3b   : > { %786 = shalt.err (!%p783_p1)
}
  0x3c   : > { %677 = dma.hbm_to_vmem [thread:$0]  (!%p979_p11), %s1170_s3, 2048, %s983_s6, [#allocation6], %s891_s15, %s891_s15, %s892_s16  }
  0x3d   : > { %s1038_s14 = sadd.s32 1, %s887_s21   ;;  %s29_s29 = sadd.s32 1, %s883_s20 }
  0x3e   : > { %s26_s17 = ssub.s32 %s887_s21, %s1038_s14  ;;  %p36_p13 = scmp.ne.s32.totalorder %s883_s20, %s879_s19 }
  0x3f   : > { %p27_p6 = scmp.eq.s32.totalorder %s26_s17, 0  ;;  %p37_p10 = scmp.eq.s32.totalorder %s887_s21, 0 }
  0x40   : > { %p1180_p3 = scmp.eq.s32.totalorder %s949_s22, 1  ;;  %p688_p7 = scmp.lt.s32.totalorder %s887_s21, 2 }
  0x41   : > { %s1054_s27 = scalar_select %p27_p6, %s883_s20, %s29_s29  }
  0x42   : > { %p1048_p5 = por %p1180_p3, %p36_p13  ;;  %p38_p9 = por %p37_p10, %p36_p13 }
  0x43   : > { %s208_s30 = sand.u32 1, %s883_s20   ;;  %s557_s6 = sshll.u32 %s887_s21, 7 }
  0x44   : > { %s1181_s23 = scalar_select %p1048_p5, 1, 0 }
  0x45   : > { %s556_s7 = sshll.u32 %s208_s30, 3  ;;  %s1061_s8 = scalar_lea.hbm %s1167_s0, %s557_s6 }
  0x46   : > { %s212_s9 = scalar_lea.vmem [#allocation2], %s556_s7  ;;  %p1065_p11 = pnand %p688_p7, %p38_p9 }
  0x47   : > { %s219_s10 = sshll.u32 %s212_s9, 4  ;;  %s209_s28 = scalar_lea.sflag [#allocation3], %s208_s30  ;;  %s1063_s10 = int_to_ptr.vmem [resolvable:$true] %s219_s10 }
  0x48   : > { %s787_s12 = scalar_lea.hbm %s1061_s8, 128  ;;  %p789_p0 = pneg %p1065_p11 }
  0x49   : > { %p788_p12 = scmp.ne.s32.totalorder %s1061_s8, %s787_s12  ;;  %s792_s17 = scalar_lea.hbm %s1167_s0, 256 }
  0x4a   : > { %p793_p13 = scmp.lt.u32.totalorder %s1061_s8, %s1167_s0  ;;  %p794_p6 = scmp.lt.u32.totalorder %s792_s17, %s787_s12 }
  0x4b   : > { %p790_p2 = pnand %p789_p0, %p788_p12  ;;  %p796_p3 = scmp.lt.u32.totalorder %s787_s12, %s1061_s8 }
  0x4c   : > { %p795_p10 = por %p794_p6, %p793_p13 }
  0x4d   : > { %p791_p1 = pneg %p790_p2 }
  0x4e   : > { %p797_p7 = por %p796_p3, %p795_p10 }
  0x50   : > { %p798_p9 = pnand %p797_p7, %p791_p1 }
  0x52   : > { %801 = shalt.err (!%p798_p9)
}
  0x53   : > { %s802_s30 = scalar_lea.vmem %s1063_s10, 128  ;;  %s893_s15 = smov [#allocation2]  }
  0x54   : > { %p803_p12 = scmp.ne.s32.totalorder %s1063_s10, %s802_s30  ;;  %s807_s16 = sshll.u32 %s893_s15, 4  ;;  %s808_s16 = int_to_ptr.vmem [resolvable:$false] %s807_s16 }
  0x55   : > { %s809_s9 = scalar_lea.vmem %s808_s16, 256  ;;  %p810_p4 = scmp.lt.s32.totalorder %s1063_s10, %s808_s16 }
  0x56   : > { %p805_p2 = pnand %p803_p12, %p789_p0  ;;  %p811_p13 = scmp.lt.s32.totalorder %s809_s9, %s802_s30 }
  0x58   : > { %p806_p5 = pneg %p805_p2  ;;  %p812_p6 = por %p811_p13, %p810_p4 }
  0x5a   : > { %p813_p10 = pnand %p812_p6, %p806_p5 }
  0x5c   : > { %816 = shalt.err (!%p813_p10)
}
  0x5d   : > { %681 = dma.hbm_to_vmem [thread:$0]  (!%p1065_p11), %s1061_s8, 128, %s1063_s10, %s209_s28  }
  0x5e   : > { %228 = sbr.rel (%p968_p8) target bundleno = 555 (0x22b), region = 40  ;;  %s1097_s12 = sand.u32 (!%p968_p8), 1, %s879_s19  }
  0x5f   : > { %s559_s13 = sshll.u32 (!%p968_p8), %s1097_s12, 3  ;;  %s231_s29 = scalar_lea.sflag (!%p968_p8), [#allocation3], %s1097_s12 }
  0x60   : > { %s234_s17 = scalar_lea.vmem (!%p968_p8), [#allocation2], %s559_s13  ;;  %p1183_p4 = scmp.ne.s32.totalorder (!%p968_p8), %s1176_s24, 0 }
  0x65   : > { %862 = dma.done.wait (%p1183_p4), %s231_s29, 128  }
  0x66   : > { %864 = vsyncadd (%p1183_p4), %s231_s29, 4294967168  ;;  %p1184_p5 = scmp.eq.s32.totalorder %s949_s22, 0 }
  0x68   : > { %866 = dma.done.wait (%p1184_p5), [#allocation6], 2304   ;;  %p1185_p8 = pmov %p1184_p5 }
  0x69   : > { %v894_v0 = vmov 0.0|0.0   ;;  %vm895_vm0 = vmmov 0   ;;  %v896_v1 = vmov 0.0   ;;  %v270_v2 = vld [vmem:[#allocation5] sm:$0xff]  ;;  %v271_v3 = vld [vmem:[#allocation5 + $0x8] sm:$0xff]  ;;  %v354_v5 = vld [vmem:[#allocation7] sm:$0xff] }
  0x6a   : > { %868 = vsyncadd (%p1185_p8), [#allocation6], 4294964992  ;;  %632 = vmatprep.subr.bf16.mxu0 %v894_v0  ;;  %594 = vmatprep.mubr.msk.f32.mxu0 %vm895_vm0, %v896_v1  ;;  %v633_v4 = vpack.c.bf16 %v271_v3, %v270_v2  ;;  %v355_v6 = vld [vmem:[#allocation7 + $0x8] sm:$0xff]  ;;  %v356_v7 = vld [vmem:[#allocation7 + $0x10] sm:$0xff]  ;;  %vm279_vm1 = vcmask 130048   ;;  %s567_s11 = sshll.u32 %s949_s22, 7 }
  0x6b   : > { %635 = vmatprep.subr.bf16.mxu1 %v894_v0  ;;  %629 = vmatprep.mubr.msk.f32.mxu1 %vm895_vm0, %v896_v1  ;;  %v636_v8 = vpack.c.bf16 %v355_v6, %v354_v5  ;;  %v357_v9 = vld [vmem:[#allocation7 + $0x18] sm:$0xff]  ;;  %v269_v10 = vld [vmem:[%s234_s17] sm:$0xff]  ;;  %v360_v15 = vld [vmem:[#allocation7 + $0x30] sm:$0xff]  ;;  %s268_s28 = scalar_lea.vmem [#allocation8], %s559_s13  ;;  %s1123_s15 = scalar_lea.hbm %s1172_s5, %s567_s11 }
  0x6c   : > { %634 = vmatpush3.bf16.msra.mxu0 %v633_v4  ;;  %v639_v11 = vpack.c.bf16 %v357_v9, %v356_v7  ;;  %v358_v12 = vld [vmem:[#allocation7 + $0x20] sm:$0xff]  ;;  %v359_v13 = vld [vmem:[#allocation7 + $0x28] sm:$0xff]  ;;  %v361_v16 = vld [vmem:[#allocation7 + $0x38] sm:$0xff]  ;;  %s462_s7 = sshll.u32 %s268_s28, 4  ;;  %s449_s16 = scalar_lea.sflag [#allocation4], %s1097_s12  ;;  %s1125_s7 = int_to_ptr.vmem [resolvable:$true] %s462_s7 }
  0x6d   : > { %637 = vmatpush3.bf16.msra.mxu1 %v636_v8  ;;  %v642_v14 = vpack.c.bf16 %v359_v13, %v358_v12  ;;  %v645_v17 = vpack.c.bf16 %v361_v16, %v360_v15  ;;  %v362_v18 = vld [vmem:[#allocation7 + $0x40] sm:$0xff]  ;;  %v363_v19 = vld [vmem:[#allocation7 + $0x48] sm:$0xff]  ;;  %v364_v21 = vld [vmem:[#allocation7 + $0x50] sm:$0xff]  ;;  %s817_s9 = scalar_lea.vmem %s1125_s7, 128  ;;  %p1186_p0 = scmp.ne.s32.totalorder %s1181_s23, 0 }
  0x6e   : > { %638 = vmatprep.subr.bf16.mxu1 %v894_v0  ;;  %v648_v20 = vpack.c.bf16 %v363_v19, %v362_v18  ;;  %v365_v22 = vld [vmem:[#allocation7 + $0x58] sm:$0xff]  ;;  %v366_v24 = vld [vmem:[#allocation7 + $0x60] sm:$0xff]  ;;  %v367_v25 = vld [vmem:[#allocation7 + $0x68] sm:$0xff]  ;;  %p818_p11 = scmp.ne.s32.totalorder %s1125_s7, %s817_s9  ;;  %s897_s22 = smov [#allocation8]  }
  0x6f   : > { %595 = vmatmul.mubr.msk.f32.vlgmr.msra.gmra.mrb[0].mxu0 %vm279_vm1, %v269_v10  ;;  %v651_v23 = vpack.c.bf16 %v365_v22, %v364_v21  ;;  %v654_v26 = vpack.c.bf16 %v367_v25, %v366_v24  ;;  %v368_v27 = vld [vmem:[#allocation7 + $0x70] sm:$0xff]  ;;  %v369_v28 = vld [vmem:[#allocation7 + $0x78] sm:$0xff]  ;;  %v563_v30 = vld [vmem:[%s1169_s2] ss:$0 sm:$0xff]  ;;  %s821_s13 = sshll.u32 %s897_s22, 4  ;;  %s822_s13 = int_to_ptr.vmem [resolvable:$false] %s821_s13 }
  0x70   : > { %v657_v29 = vpack.c.bf16 %v369_v28, %v368_v27  ;;  %v565_v35 = vld [vmem:[%s1171_s4] ss:$0 sm:$0xff]  ;;  %p819_p1 = pnand %p818_p11, %p1186_p0  ;;  %s823_s29 = scalar_lea.vmem %s822_s13, 256 }
  0x71   : > { %640 = vmatpush3.bf16.msra.mxu1 %v639_v11  ;;  %p824_p7 = scmp.lt.s32.totalorder %s1125_s7, %s822_s13  ;;  %p825_p9 = scmp.lt.s32.totalorder %s823_s29, %s817_s9 }
  0x72   : > { %641 = vmatprep.subr.bf16.mxu1 %v894_v0  ;;  %p820_p3 = pneg %p819_p1 }
  0x73   : > { %p826_p12 = por %p825_p9, %p824_p7 }
  0x75   : > { %643 = vmatpush3.bf16.msra.mxu1 %v642_v14  ;;  %p827_p2 = pnand %p826_p12, %p820_p3 }
  0x76   : > { %644 = vmatprep.subr.bf16.mxu1 %v894_v0 }
  0x79   : > { %646 = vmatpush3.bf16.msra.mxu1 %v645_v17 }
  0x7a   : > { %647 = vmatprep.subr.bf16.mxu1 %v894_v0 }
  0x7d   : > { %649 = vmatpush3.bf16.msra.mxu1 %v648_v20 }
  0x7e   : > { %650 = vmatprep.subr.bf16.mxu1 %v894_v0 }
  0x81   : > { %652 = vmatpush3.bf16.msra.mxu1 %v651_v23 }
  0x82   : > { %653 = vmatprep.subr.bf16.mxu1 %v894_v0 }
  0x85   : > { %655 = vmatpush3.bf16.msra.mxu1 %v654_v26 }
  0x86   : > { %656 = vmatprep.subr.bf16.mxu1 %v894_v0 }
  0x89   : > { %658 = vmatpush3.bf16.msra.mxu1 %v657_v29 }
 0x142   : > { %v349_v31 = vpop.f32.mrb[0].mxu0 }
 0x143   : > { %v350_v32 = vadd.f32 %v563_v30, %v349_v31  ;;  %v596_v33 = vpop.f32.mrb[1].mxu0 }
 0x145   : > { %v353_v34 = vmax.f32 %v350_v32, 0.0 }
 0x147   : > { %630 = vmatmul.mubr.f32.vlgmr.msra.gmra.mrb[0].mxu1 %v353_v34 }
 0x21a   : > { %v443_v36 = vpop.f32.mrb[0].mxu1 }
 0x21b   : > { %v444_v37 = vadd.f32 %v565_v35, %v443_v36  ;;  %v631_v38 = vpop.f32.mrb[1].mxu1 }
 0x21d   : > { %447 = vst [vmem:[%s268_s28] sm:$0xff] %v444_v37 }
 0x21e   : > { %830 = shalt.err (!%p827_p2)
}
 0x21f   : > { %s831_s12 = scalar_lea.hbm %s1123_s15, 128  ;;  %s835_s26 = scalar_lea.hbm %s1172_s5, 256 }
 0x220   : > { %p832_p13 = scmp.ne.s32.totalorder %s1123_s15, %s831_s12  ;;  %p836_p4 = scmp.lt.u32.totalorder %s1123_s15, %s1172_s5 }
 0x221   : > { %p837_p5 = scmp.lt.u32.totalorder %s835_s26, %s831_s12  ;;  %p839_p11 = scmp.lt.u32.totalorder %s831_s12, %s1123_s15 }
 0x222   : > { %p833_p6 = pnand %p832_p13, %p1186_p0 }
 0x223   : > { %p838_p8 = por %p837_p5, %p836_p4 }
 0x224   : > { %p834_p10 = pneg %p833_p6 }
 0x225   : > { %p840_p1 = por %p839_p11, %p838_p8 }
 0x227   : > { %p841_p3 = pnand %p840_p1, %p834_p10 }
 0x229   : > { %844 = shalt.err (!%p841_p3)
}
 0x22a   : > { %669 = dma.vmem_to_hbm [thread:$0]  (%p1186_p0), %s1125_s7, 128, %s1123_s15, %s449_s16  }
 0x22b PF: > { %s474_s11 = sand.u32 1, %s875_s18   ;;  %p1187_p7 = scmp.ne.s32.totalorder %s1177_s25, 0 }
 0x22c   : > { %p1188_p9 = scmp.ge.s32.totalorder %s887_s21, 2  ;;  %s475_s28 = scalar_lea.sflag [#allocation4], %s474_s11 }
 0x22e   : > { %p683_p12 = pnand %p1188_p9, %p1187_p7 }
 0x230   : > { %870 = dma.done.wait (!%p683_p12), %s475_s28, 128  }
 0x231   : > { %872 = vsyncadd (!%p683_p12), %s475_s28, 4294967168  ;;  %p19_p2 = scmp.ge.s32.totalorder %s1038_s14, 4   ;;  %s1189_s18 = smov %s879_s19 }
 0x232   : > { %s1190_s19 = smov %s883_s20  ;;  %s1191_s20 = smov %s1054_s27 }
 0x233   : > { %s1192_s21 = smov %s1038_s14  ;;  %21 = sbr.rel (!%p19_p2) target bundleno = 6 (0x6), region = 93 }
 0x23a   :  { %480 = vsyncpa [#allocation3], 1 }
 0x23b   :  { %482 = vsyncpa [#allocation3 + $0x1], 1 }
 0x23c   :  { %483 = vsyncpa [#allocation6], 1 }
 0x23d   :  { %484 = vsyncpa [#allocation4], 1 }
 0x23e   :  { %486 = vsyncpa [#allocation4 + $0x1], 1 }

// kernel: tpu_custom_call.1
= control target key start
LH: loop header
LB: loop body
LE: loop exit
PB: predicated region body
PF: predicated region fallthrough
CT: control target
= control target key end

     0   :  { %10 = vsyncpa [#allocation3], 0  ;;  %s1167_s0 = inlined_call_operand.hbm [shape: f32[16,16], index: 0, kind: input, shape index: {}]   ;;  %s1168_s1 = inlined_call_operand.hbm [shape: f32[16,128], index: 1, kind: input, shape index: {}]   ;;  %s1169_s2 = inlined_call_operand.vmem [shape: f32[1,128], index: 2, kind: input, shape index: {}]   ;;  %s1170_s3 = inlined_call_operand.hbm [shape: f32[128,128], index: 3, kind: input, shape index: {}]   ;;  %s1171_s4 = inlined_call_operand.vmem [shape: f32[1,128], index: 4, kind: input, shape index: {}]   ;;  %s1172_s5 = inlined_call_operand.hbm [shape: f32[16,128], index: 5, kind: output, shape index: {}]  }
   0x1   :  { %12 = vsyncpa [#allocation3 + $0x1], 0 }
   0x2   :  { %13 = vsyncpa [#allocation6], 0 }
   0x3   :  { %14 = vsyncpa [#allocation4], 0 }
   0x4   :  { %16 = vsyncpa [#allocation4 + $0x1], 0  ;;  %s928_s18 = smov 0   ;;  %s930_s19 = smov 0  }
   0x5   :  { %s932_s20 = smov 0   ;;  %s934_s21 = smov 0  }
   0x6 LB: > { %s949_s22 = sadd.s32 4294967295, %s887_s21   ;;  %s551_s23 = sadd.s32 4294967294, %s887_s21   ;;  %s887_s21 = sphi %s934_s21, %s1192_s21   ;;  %s883_s20 = sphi %s932_s20, %s1191_s20   ;;  %s879_s19 = sphi %s930_s19, %s1190_s19   ;;  %s875_s18 = sphi %s928_s18, %s1189_s18  }
   0x7   : > { %p42_p0 = scmp.ne.s32.totalorder %s879_s19, %s875_s18  ;;  %p1173_p1 = scmp.eq.s32.totalorder %s949_s22, 0 }
   0x8   : > { %p156_p3 = scmp.eq.s32.totalorder %s551_s23, 1  ;;  %p552_p5 = scmp.ge.s32.totalorder %s887_s21, 1 }
   0x9   : > { %p958_p4 = por %p1173_p1, %p42_p0  ;;  %p163_p7 = scmp.lt.s32.totalorder %s887_s21, 3 }
   0xa   : > { %p963_p6 = por %p156_p3, %p42_p0  ;;  %s889_s27 = smov [#allocation5]  }
   0xb   : > { %s1176_s24 = scalar_select %p958_p4, 1, 0 }
   0xc   : > { %s1177_s25 = scalar_select %p963_p6, 1, 0 }
   0xd   : > { %p968_p8 = pnand %p552_p5, %p163_p7  ;;  %s175_s28 = sshll.u32 %s889_s27, 4  ;;  %s972_s28 = int_to_ptr.vmem [resolvable:$true] %s175_s28 }
   0xe   : > { %s890_s30 = smov [#allocation7]   ;;  %s731_s9 = scalar_lea.hbm %s1168_s1, 256 }
   0xf   : > { %p671_p9 = pneg %p968_p8  ;;  %s191_s6 = sshll.u32 %s890_s30, 4  ;;  %s983_s6 = int_to_ptr.vmem [resolvable:$true] %s191_s6 }
  0x10   : > { %p732_p12 = scmp.ne.s32.totalorder %s1168_s1, %s731_s9  ;;  %p738_p5 = scmp.lt.u32.totalorder %s731_s9, %s1168_s1 }
  0x11   : > { %p979_p11 = pnand %p671_p9, %p1173_p1 }
  0x13   : > { %p733_p13 = pneg %p979_p11 }
  0x15   : > { %p734_p0 = pnand %p733_p13, %p732_p12 }
  0x17   : > { %p735_p3 = pneg %p734_p0 }
  0x19   : > { %p740_p7 = pnand %p738_p5, %p735_p3 }
  0x1b   : > { %743 = shalt.err (!%p740_p7)
}
  0x1c   : > { %s744_s14 = scalar_lea.vmem %s972_s28, 256  ;;  %p752_p2 = scmp.lt.s32.totalorder %s972_s28, %s972_s28 }
  0x1d   : > { %p745_p9 = scmp.ne.s32.totalorder %s972_s28, %s744_s14  ;;  %p753_p12 = scmp.lt.s32.totalorder %s744_s14, %s744_s14 }
  0x1f   : > { %p747_p10 = pnand %p745_p9, %p733_p13  ;;  %p754_p0 = por %p753_p12, %p752_p2 }
  0x21   : > { %p748_p1 = pneg %p747_p10 }
  0x23   : > { %p755_p6 = pnand %p754_p0, %p748_p1 }
  0x25   : > { %758 = shalt.err (!%p755_p6)
}
  0x26   : > { %s891_s15 = smov 128   ;;  %s892_s16 = smov 8  }
  0x27   : > { %674 = dma.hbm_to_vmem [thread:$0]  (!%p979_p11), %s1168_s1, 256, %s972_s28, [#allocation6], %s891_s15, %s891_s15, %s892_s16  }
  0x28   : > { %s759_s7 = scalar_lea.hbm %s1170_s3, 2048 }
  0x29   : > { %p760_p2 = scmp.ne.s32.totalorder %s1170_s3, %s759_s7  ;;  %p766_p10 = scmp.lt.u32.totalorder %s759_s7, %s1170_s3 }
  0x2b   : > { %p762_p1 = pnand %p760_p2, %p733_p13 }
  0x2d   : > { %p763_p6 = pneg %p762_p1 }
  0x2f   : > { %p768_p3 = pnand %p766_p10, %p763_p6 }
  0x31   : > { %771 = shalt.err (!%p768_p3)
}
  0x32   : > { %s772_s28 = scalar_lea.vmem %s983_s6, 2048  ;;  %p780_p12 = scmp.lt.s32.totalorder %s983_s6, %s983_s6 }
  0x33   : > { %p773_p5 = scmp.ne.s32.totalorder %s983_s6, %s772_s28  ;;  %p781_p0 = scmp.lt.s32.totalorder %s772_s28, %s772_s28 }
  0x35   : > { %p775_p7 = pnand %p773_p5, %p733_p13  ;;  %p782_p2 = por %p781_p0, %p780_p12 }
  0x37   : > { %p776_p9 = pneg %p775_p7 }
  0x39   : > { %p783_p1 = pnand %p782_p2, %p776_p9 }
  0x3b   : > { %786 = shalt.err (!%p783_p1)
}
  0x3c   : > { %677 = dma.hbm_to_vmem [thread:$0]  (!%p979_p11), %s1170_s3, 2048, %s983_s6, [#allocation6], %s891_s15, %s891_s15, %s892_s16  }
  0x3d   : > { %s1038_s14 = sadd.s32 1, %s887_s21   ;;  %s29_s29 = sadd.s32 1, %s883_s20 }
  0x3e   : > { %s26_s17 = ssub.s32 %s887_s21, %s1038_s14  ;;  %p36_p13 = scmp.ne.s32.totalorder %s883_s20, %s879_s19 }
  0x3f   : > { %p27_p6 = scmp.eq.s32.totalorder %s26_s17, 0  ;;  %p37_p10 = scmp.eq.s32.totalorder %s887_s21, 0 }
  0x40   : > { %p1180_p3 = scmp.eq.s32.totalorder %s949_s22, 1  ;;  %p688_p7 = scmp.lt.s32.totalorder %s887_s21, 2 }
  0x41   : > { %s1054_s27 = scalar_select %p27_p6, %s883_s20, %s29_s29  }
  0x42   : > { %p1048_p5 = por %p1180_p3, %p36_p13  ;;  %p38_p9 = por %p37_p10, %p36_p13 }
  0x43   : > { %s208_s30 = sand.u32 1, %s883_s20   ;;  %s557_s6 = sshll.u32 %s887_s21, 7 }
  0x44   : > { %s1181_s23 = scalar_select %p1048_p5, 1, 0 }
  0x45   : > { %s556_s7 = sshll.u32 %s208_s30, 3  ;;  %s1061_s8 = scalar_lea.hbm %s1167_s0, %s557_s6 }
  0x46   : > { %s212_s9 = scalar_lea.vmem [#allocation2], %s556_s7  ;;  %p1065_p11 = pnand %p688_p7, %p38_p9 }
  0x47   : > { %s219_s10 = sshll.u32 %s212_s9, 4  ;;  %s209_s28 = scalar_lea.sflag [#allocation3], %s208_s30  ;;  %s1063_s10 = int_to_ptr.vmem [resolvable:$true] %s219_s10 }
  0x48   : > { %s787_s12 = scalar_lea.hbm %s1061_s8, 128  ;;  %p789_p0 = pneg %p1065_p11 }
  0x49   : > { %p788_p12 = scmp.ne.s32.totalorder %s1061_s8, %s787_s12  ;;  %s792_s17 = scalar_lea.hbm %s1167_s0, 256 }
  0x4a   : > { %p793_p13 = scmp.lt.u32.totalorder %s1061_s8, %s1167_s0  ;;  %p794_p6 = scmp.lt.u32.totalorder %s792_s17, %s787_s12 }
  0x4b   : > { %p790_p2 = pnand %p789_p0, %p788_p12  ;;  %p796_p3 = scmp.lt.u32.totalorder %s787_s12, %s1061_s8 }
  0x4c   : > { %p795_p10 = por %p794_p6, %p793_p13 }
  0x4d   : > { %p791_p1 = pneg %p790_p2 }
  0x4e   : > { %p797_p7 = por %p796_p3, %p795_p10 }
  0x50   : > { %p798_p9 = pnand %p797_p7, %p791_p1 }
  0x52   : > { %801 = shalt.err (!%p798_p9)
}
  0x53   : > { %s802_s30 = scalar_lea.vmem %s1063_s10, 128  ;;  %s893_s15 = smov [#allocation2]  }
  0x54   : > { %p803_p12 = scmp.ne.s32.totalorder %s1063_s10, %s802_s30  ;;  %s807_s16 = sshll.u32 %s893_s15, 4  ;;  %s808_s16 = int_to_ptr.vmem [resolvable:$false] %s807_s16 }
  0x55   : > { %s809_s9 = scalar_lea.vmem %s808_s16, 256  ;;  %p810_p4 = scmp.lt.s32.totalorder %s1063_s10, %s808_s16 }
  0x56   : > { %p805_p2 = pnand %p803_p12, %p789_p0  ;;  %p811_p13 = scmp.lt.s32.totalorder %s809_s9, %s802_s30 }
  0x58   : > { %p806_p5 = pneg %p805_p2  ;;  %p812_p6 = por %p811_p13, %p810_p4 }
  0x5a   : > { %p813_p10 = pnand %p812_p6, %p806_p5 }
  0x5c   : > { %816 = shalt.err (!%p813_p10)
}
  0x5d   : > { %681 = dma.hbm_to_vmem [thread:$0]  (!%p1065_p11), %s1061_s8, 128, %s1063_s10, %s209_s28  }
  0x5e   : > { %228 = sbr.rel (%p968_p8) target bundleno = 555 (0x22b), region = 40  ;;  %s1097_s12 = sand.u32 (!%p968_p8), 1, %s879_s19  }
  0x5f   : > { %s559_s13 = sshll.u32 (!%p968_p8), %s1097_s12, 3  ;;  %s231_s29 = scalar_lea.sflag (!%p968_p8), [#allocation3], %s1097_s12 }
  0x60   : > { %s234_s17 = scalar_lea.vmem (!%p968_p8), [#allocation2], %s559_s13  ;;  %p1183_p4 = scmp.ne.s32.totalorder (!%p968_p8), %s1176_s24, 0 }
  0x65   : > { %862 = dma.done.wait (%p1183_p4), %s231_s29, 128  }
  0x66   : > { %864 = vsyncadd (%p1183_p4), %s231_s29, 4294967168  ;;  %p1184_p5 = scmp.eq.s32.totalorder %s949_s22, 0 }
  0x68   : > { %866 = dma.done.wait (%p1184_p5), [#allocation6], 2304   ;;  %p1185_p8 = pmov %p1184_p5 }
  0x69   : > { %v894_v0 = vmov 0.0|0.0   ;;  %vm895_vm0 = vmmov 0   ;;  %v896_v1 = vmov 0.0   ;;  %v270_v2 = vld [vmem:[#allocation5] sm:$0xff]  ;;  %v271_v3 = vld [vmem:[#allocation5 + $0x8] sm:$0xff]  ;;  %v354_v5 = vld [vmem:[#allocation7] sm:$0xff] }
  0x6a   : > { %868 = vsyncadd (%p1185_p8), [#allocation6], 4294964992  ;;  %632 = vmatprep.subr.bf16.mxu0 %v894_v0  ;;  %594 = vmatprep.mubr.msk.f32.mxu0 %vm895_vm0, %v896_v1  ;;  %v633_v4 = vpack.c.bf16 %v271_v3, %v270_v2  ;;  %v355_v6 = vld [vmem:[#allocation7 + $0x8] sm:$0xff]  ;;  %v356_v7 = vld [vmem:[#allocation7 + $0x10] sm:$0xff]  ;;  %vm279_vm1 = vcmask 130048   ;;  %s567_s11 = sshll.u32 %s949_s22, 7 }
  0x6b   : > { %635 = vmatprep.subr.bf16.mxu1 %v894_v0  ;;  %629 = vmatprep.mubr.msk.f32.mxu1 %vm895_vm0, %v896_v1  ;;  %v636_v8 = vpack.c.bf16 %v355_v6, %v354_v5  ;;  %v357_v9 = vld [vmem:[#allocation7 + $0x18] sm:$0xff]  ;;  %v269_v10 = vld [vmem:[%s234_s17] sm:$0xff]  ;;  %v360_v15 = vld [vmem:[#allocation7 + $0x30] sm:$0xff]  ;;  %s268_s28 = scalar_lea.vmem [#allocation8], %s559_s13  ;;  %s1123_s15 = scalar_lea.hbm %s1172_s5, %s567_s11 }
  0x6c   : > { %634 = vmatpush3.bf16.msra.mxu0 %v633_v4  ;;  %v639_v11 = vpack.c.bf16 %v357_v9, %v356_v7  ;;  %v358_v12 = vld [vmem:[#allocation7 + $0x20] sm:$0xff]  ;;  %v359_v13 = vld [vmem:[#allocation7 + $0x28] sm:$0xff]  ;;  %v361_v16 = vld [vmem:[#allocation7 + $0x38] sm:$0xff]  ;;  %s462_s7 = sshll.u32 %s268_s28, 4  ;;  %s449_s16 = scalar_lea.sflag [#allocation4], %s1097_s12  ;;  %s1125_s7 = int_to_ptr.vmem [resolvable:$true] %s462_s7 }
  0x6d   : > { %637 = vmatpush3.bf16.msra.mxu1 %v636_v8  ;;  %v642_v14 = vpack.c.bf16 %v359_v13, %v358_v12  ;;  %v645_v17 = vpack.c.bf16 %v361_v16, %v360_v15  ;;  %v362_v18 = vld [vmem:[#allocation7 + $0x40] sm:$0xff]  ;;  %v363_v19 = vld [vmem:[#allocation7 + $0x48] sm:$0xff]  ;;  %v364_v21 = vld [vmem:[#allocation7 + $0x50] sm:$0xff]  ;;  %s817_s9 = scalar_lea.vmem %s1125_s7, 128  ;;  %p1186_p0 = scmp.ne.s32.totalorder %s1181_s23, 0 }
  0x6e   : > { %638 = vmatprep.subr.bf16.mxu1 %v894_v0  ;;  %v648_v20 = vpack.c.bf16 %v363_v19, %v362_v18  ;;  %v365_v22 = vld [vmem:[#allocation7 + $0x58] sm:$0xff]  ;;  %v366_v24 = vld [vmem:[#allocation7 + $0x60] sm:$0xff]  ;;  %v367_v25 = vld [vmem:[#allocation7 + $0x68] sm:$0xff]  ;;  %p818_p11 = scmp.ne.s32.totalorder %s1125_s7, %s817_s9  ;;  %s897_s22 = smov [#allocation8]  }
  0x6f   : > { %595 = vmatmul.mubr.msk.f32.vlgmr.msra.gmra.mrb[0].mxu0 %vm279_vm1, %v269_v10  ;;  %v651_v23 = vpack.c.bf16 %v365_v22, %v364_v21  ;;  %v654_v26 = vpack.c.bf16 %v367_v25, %v366_v24  ;;  %v368_v27 = vld [vmem:[#allocation7 + $0x70] sm:$0xff]  ;;  %v369_v28 = vld [vmem:[#allocation7 + $0x78] sm:$0xff]  ;;  %v563_v30 = vld [vmem:[%s1169_s2] ss:$0 sm:$0xff]  ;;  %s821_s13 = sshll.u32 %s897_s22, 4  ;;  %s822_s13 = int_to_ptr.vmem [resolvable:$false] %s821_s13 }
  0x70   : > { %v657_v29 = vpack.c.bf16 %v369_v28, %v368_v27  ;;  %v565_v35 = vld [vmem:[%s1171_s4] ss:$0 sm:$0xff]  ;;  %p819_p1 = pnand %p818_p11, %p1186_p0  ;;  %s823_s29 = scalar_lea.vmem %s822_s13, 256 }
  0x71   : > { %640 = vmatpush3.bf16.msra.mxu1 %v639_v11  ;;  %p824_p7 = scmp.lt.s32.totalorder %s1125_s7, %s822_s13  ;;  %p825_p9 = scmp.lt.s32.totalorder %s823_s29, %s817_s9 }
  0x72   : > { %641 = vmatprep.subr.bf16.mxu1 %v894_v0  ;;  %p820_p3 = pneg %p819_p1 }
  0x73   : > { %p826_p12 = por %p825_p9, %p824_p7 }
  0x75   : > { %643 = vmatpush3.bf16.msra.mxu1 %v642_v14  ;;  %p827_p2 = pnand %p826_p12, %p820_p3 }
  0x76   : > { %644 = vmatprep.subr.bf16.mxu1 %v894_v0 }
  0x79   : > { %646 = vmatpush3.bf16.msra.mxu1 %v645_v17 }
  0x7a   : > { %647 = vmatprep.subr.bf16.mxu1 %v894_v0 }
  0x7d   : > { %649 = vmatpush3.bf16.msra.mxu1 %v648_v20 }
  0x7e   : > { %650 = vmatprep.subr.bf16.mxu1 %v894_v0 }
  0x81   : > { %652 = vmatpush3.bf16.msra.mxu1 %v651_v23 }
  0x82   : > { %653 = vmatprep.subr.bf16.mxu1 %v894_v0 }
  0x85   : > { %655 = vmatpush3.bf16.msra.mxu1 %v654_v26 }
  0x86   : > { %656 = vmatprep.subr.bf16.mxu1 %v894_v0 }
  0x89   : > { %658 = vmatpush3.bf16.msra.mxu1 %v657_v29 }
 0x142   : > { %v349_v31 = vpop.f32.mrb[0].mxu0 }
 0x143   : > { %v350_v32 = vadd.f32 %v563_v30, %v349_v31  ;;  %v596_v33 = vpop.f32.mrb[1].mxu0 }
 0x145   : > { %v353_v34 = vmax.f32 %v350_v32, 0.0 }
 0x147   : > { %630 = vmatmul.mubr.f32.vlgmr.msra.gmra.mrb[0].mxu1 %v353_v34 }
 0x21a   : > { %v443_v36 = vpop.f32.mrb[0].mxu1 }
 0x21b   : > { %v444_v37 = vadd.f32 %v565_v35, %v443_v36  ;;  %v631_v38 = vpop.f32.mrb[1].mxu1 }
 0x21d   : > { %447 = vst [vmem:[%s268_s28] sm:$0xff] %v444_v37 }
 0x21e   : > { %830 = shalt.err (!%p827_p2)
}
 0x21f   : > { %s831_s12 = scalar_lea.hbm %s1123_s15, 128  ;;  %s835_s26 = scalar_lea.hbm %s1172_s5, 256 }
 0x220   : > { %p832_p13 = scmp.ne.s32.totalorder %s1123_s15, %s831_s12  ;;  %p836_p4 = scmp.lt.u32.totalorder %s1123_s15, %s1172_s5 }
 0x221   : > { %p837_p5 = scmp.lt.u32.totalorder %s835_s26, %s831_s12  ;;  %p839_p11 = scmp.lt.u32.totalorder %s831_s12, %s1123_s15 }
 0x222   : > { %p833_p6 = pnand %p832_p13, %p1186_p0 }
 0x223   : > { %p838_p8 = por %p837_p5, %p836_p4 }
 0x224   : > { %p834_p10 = pneg %p833_p6 }
 0x225   : > { %p840_p1 = por %p839_p11, %p838_p8 }
 0x227   : > { %p841_p3 = pnand %p840_p1, %p834_p10 }
 0x229   : > { %844 = shalt.err (!%p841_p3)
}
 0x22a   : > { %669 = dma.vmem_to_hbm [thread:$0]  (%p1186_p0), %s1125_s7, 128, %s1123_s15, %s449_s16  }
 0x22b PF: > { %s474_s11 = sand.u32 1, %s875_s18   ;;  %p1187_p7 = scmp.ne.s32.totalorder %s1177_s25, 0 }
 0x22c   : > { %p1188_p9 = scmp.ge.s32.totalorder %s887_s21, 2  ;;  %s475_s28 = scalar_lea.sflag [#allocation4], %s474_s11 }
 0x22e   : > { %p683_p12 = pnand %p1188_p9, %p1187_p7 }
 0x230   : > { %870 = dma.done.wait (!%p683_p12), %s475_s28, 128  }
 0x231   : > { %872 = vsyncadd (!%p683_p12), %s475_s28, 4294967168  ;;  %p19_p2 = scmp.ge.s32.totalorder %s1038_s14, 4   ;;  %s1189_s18 = smov %s879_s19 }
 0x232   : > { %s1190_s19 = smov %s883_s20  ;;  %s1191_s20 = smov %s1054_s27 }
 0x233   : > { %s1192_s21 = smov %s1038_s14  ;;  %21 = sbr.rel (!%p19_p2) target bundleno = 6 (0x6), region = 93 }
 0x23a   :  { %480 = vsyncpa [#allocation3], 1 }
 0x23b   :  { %482 = vsyncpa [#allocation3 + $0x1], 1 }
 0x23c   :  { %483 = vsyncpa [#allocation6], 1 }
 0x23d   :  { %484 = vsyncpa [#allocation4], 1 }
 0x23e   :  { %486 = vsyncpa [#allocation4 + $0x1], 1 }

</bundles_post_ra>
